<compile_context>
chip_gen: v6e
topology: v6e:2x2x1
jax: 0.10.0
libtpu: 0.0.40
codegen_flags: <defaults>
</compile_context>

<pallas_src>
import functools

import jax
import jax.numpy as jnp
from jax.experimental import pallas as pl
from jax.experimental.pallas import tpu as pltpu

EPS = 1e-5  # nn.InstanceNorm2d default eps (affine=False, biased variance)


def _unet_down_kernel(w_ref, p_ref, o_ref, acc_ref, *, normalize):
    # w_ref  : (Cout, tk)    bf16 weight tile (K-slice)
    # p_ref  : (1, tk, HW)   bf16 im2col patch tile for one batch sample
    # o_ref  : (1, Cout, HW) f32 output (lane-dense: HW on lanes)
    # acc_ref: (Cout, HW)    f32 accumulator, resident across the K axis
    k = pl.program_id(1)

    @pl.when(k == 0)
    def _():
        acc_ref[...] = jnp.zeros_like(acc_ref)

    acc_ref[...] += jnp.dot(w_ref[...], p_ref[0],
                            preferred_element_type=jnp.float32)

    @pl.when(k == pl.num_programs(1) - 1)
    def _():
        y = acc_ref[...]                                   # (Cout, HW) f32
        if normalize:
            inv_hw = 1.0 / y.shape[-1]
            s1 = jnp.sum(y, axis=-1, keepdims=True)        # single pass:
            s2 = jnp.sum(y * y, axis=-1, keepdims=True)    # sum & sum-of-squares
            mean = s1 * inv_hw
            var = jnp.maximum(s2 * inv_hw - mean * mean, 0.0)
            y = (y - mean) * jax.lax.rsqrt(var + EPS)      # rsqrt -> EUP
        o_ref[0] = jnp.maximum(y, 0.2 * y).astype(o_ref.dtype)  # LeakyReLU(0.2)


def unet_down_forward(x, weight, *, normalize=True):
    """x: (N, Cin, H, W); weight: (Cout, Cin, 4, 4) (PyTorch Conv2d layout).
       Returns (N, Cout, H//2, W//2) in NCHW, float32."""
    N, Cin, H, W = x.shape
    Cout, Cin_w, KH, KW = weight.shape
    assert Cin == Cin_w and KH == 4 and KW == 4
    assert H % 2 == 0 and W % 2 == 0
    OH, OW = H // 2, W // 2
    HW = OH * OW
    K = Cin * 16  # always a multiple of 8 (sublane-aligned)

    # Pad by 1 spatially (conv padding=1), then im2col via stride-2 slices.
    xpad = jnp.pad(x.astype(jnp.float32), ((0, 0), (0, 0), (1, 1), (1, 1)))
    views = []
    for ky in range(4):
        for kx in range(4):
            # xpad[:, :, ky + 2*oy, kx + 2*ox] for oy<OH, ox<OW
            views.append(xpad[:, :, ky:ky + 2 * OH - 1:2, kx:kx + 2 * OW - 1:2])
    P = jnp.stack(views, axis=2)                 # (N, Cin, 16, OH, OW)
    P = P.reshape(N, K, HW)                      # k-index = ci*16 + ky*4 + kx

    Wm = weight.astype(jnp.float32).reshape(Cout, K)  # same k-index ordering

    # K-reduction tiling (innermost "arbitrary" grid axis). tk must be a
    # multiple of 128 when K is split (weight block last dim), so pad K up.
    TK = 1024
    if K <= TK:
        Kp, tk = K, K
    else:
        Kp = ((K + TK - 1) // TK) * TK
        tk = TK
        if Kp != K:
            P = jnp.pad(P, ((0, 0), (0, Kp - K), (0, 0)))
            Wm = jnp.pad(Wm, ((0, 0), (0, Kp - K)))
    kt = Kp // tk

    # bf16 MXU operands; f32 accumulation inside the kernel.
    P_bf = P.astype(jnp.bfloat16)
    W_bf = Wm.astype(jnp.bfloat16)

    cost = pl.CostEstimate(
        flops=2 * N * Cout * HW * Kp + 8 * N * Cout * HW,
        transcendentals=N * Cout,
        bytes_accessed=N * Kp * HW * 2 + Cout * Kp * 2 + N * Cout * HW * 4,
    )

    out_flat = pl.pallas_call(
        functools.partial(_unet_down_kernel, normalize=normalize),
        out_shape=jax.ShapeDtypeStruct((N, Cout, HW), jnp.float32),
        grid=(N, kt),
        in_specs=[
            pl.BlockSpec((Cout, tk), lambda n, k: (0, k)),
            pl.BlockSpec((1, tk, HW), lambda n, k: (n, k, 0)),
        ],
        out_specs=pl.BlockSpec((1, Cout, HW), lambda n, k: (n, 0, 0)),
        scratch_shapes=[pltpu.VMEM((Cout, HW), jnp.float32)],
        compiler_params=pltpu.CompilerParams(
            dimension_semantics=("parallel", "arbitrary"),
            vmem_limit_bytes=64 * 1024 * 1024,
        ),
        cost_estimate=cost,
    )(W_bf, P_bf)

    # Output is already channel-major (NCHW) and lane-dense; just reshape.
    return out_flat.reshape(N, Cout, OH, OW)


def unet_down_reference(x, weight, *, normalize=True):
    """Pure-JAX reference for correctness checking."""
    y = jax.lax.conv_general_dilated(
        x.astype(jnp.float32), weight.astype(jnp.float32),
        window_strides=(2, 2), padding=((1, 1), (1, 1)),
        dimension_numbers=("NCHW", "OIHW", "NCHW"))
    if normalize:
        mean = y.mean(axis=(2, 3), keepdims=True)
        var = ((y - mean) ** 2).mean(axis=(2, 3), keepdims=True)
        y = (y - mean) * jax.lax.rsqrt(var + EPS)
    return jnp.maximum(y, 0.2 * y)  # LeakyReLU(0.2)


if __name__ == "__main__":
    key = jax.random.PRNGKey(0)
    k_x, k_w = jax.random.split(key, 2)

    N, Cin, Cout, H, W = 2, 4, 8, 32, 32          # small shapes
    x = jax.random.normal(k_x, (N, Cin, H, W), jnp.float32)
    # PyTorch Conv2d weight shape: (out_channels, in_channels, 4, 4)
    weight = 0.1 * jax.random.normal(k_w, (Cout, Cin, 4, 4), jnp.float32)

    out = jax.block_until_ready(unet_down_forward(x, weight))
    ref = jax.block_until_ready(unet_down_reference(x, weight))

    assert out.shape == (N, Cout, H // 2, W // 2), out.shape
    # bf16 MXU operands -> loosened tolerance (norm/epilogue stay f32).
    assert jnp.allclose(out, ref, atol=5e-2, rtol=5e-2), float(jnp.abs(out - ref).max())
    print("KERNEL_OK")
</pallas_src>

<mosaic_0001>
module attributes {stable_mosaic.version = 11 : i64} {
  func.func @_unet_down_kernel(%arg0: i32, %arg1: i32, %arg2: memref<8x64xbf16, #tpu.memory_space<vmem>>, %arg3: memref<1x64x256xbf16, #tpu.memory_space<vmem>>, %arg4: memref<1x8x256xf32, #tpu.memory_space<vmem>>, %arg5: memref<8x256xf32, #tpu.memory_space<vmem>>) attributes {dimension_semantics = [#tpu.dimension_semantics<parallel>, #tpu.dimension_semantics<arbitrary>], iteration_bounds = array<i64: 2, 1>, scalar_prefetch = 0 : i64, scratch_operands = 1 : i64, tpu.core_type = #tpu.core_type<tc>, window_params = [{transform_indices = @transform_0, window_bounds = array<i64: 8, 64>}, {transform_indices = @transform_1, window_bounds = array<i64: 1, 64, 256>}, {transform_indices = @transform_2, window_bounds = array<i64: 1, 8, 256>}]} {
    %c0_i32 = arith.constant 0 : i32
    %0 = arith.cmpi eq, %arg1, %c0_i32 : i32
    %1 = arith.extui %0 : i1 to i32
    %c0_i32_0 = arith.constant 0 : i32
    %2 = arith.cmpi ne, %1, %c0_i32_0 : i32
    scf.if %2 {
      %cst_11 = arith.constant 0.000000e+00 : f32
      %13 = vector.broadcast %cst_11 : f32 to vector<8x256xf32>
      %c0_12 = arith.constant 0 : index
      %c0_13 = arith.constant 0 : index
      %14 = vector.load %arg5[%c0_12, %c0_13] : memref<8x256xf32, #tpu.memory_space<vmem>>, vector<8x256xf32>
      tpu.vector_store %arg5[%c0_12, %c0_13], %13 {strides = array<i32>} : memref<8x256xf32, #tpu.memory_space<vmem>>, vector<8x256xf32>,
    } else {
    }
    %c0 = arith.constant 0 : index
    %c0_1 = arith.constant 0 : index
    %3 = vector.load %arg5[%c0, %c0_1] : memref<8x256xf32, #tpu.memory_space<vmem>>, vector<8x256xf32>
    %c0_2 = arith.constant 0 : index
    %c0_3 = arith.constant 0 : index
    %4 = vector.load %arg2[%c0_2, %c0_3] : memref<8x64xbf16, #tpu.memory_space<vmem>>, vector<8x64xbf16>
    %c0_4 = arith.constant 0 : index
    %c0_5 = arith.constant 0 : index
    %c0_6 = arith.constant 0 : index
    %5 = vector.load %arg3[%c0_4, %c0_5, %c0_6] : memref<1x64x256xbf16, #tpu.memory_space<vmem>>, vector<1x64x256xbf16>
    %6 = vector.shape_cast %5 : vector<1x64x256xbf16> to vector<64x256xbf16>
    %cst = arith.constant dense<0.000000e+00> : vector<8x256xf32>
    %7 = tpu.matmul %4, %6, %cst {dimension_numbers = #tpu.dot_dimension_numbers<[1], [0], [0], [1], [0, 0, 1, 1], [], []>} : vector<8x64xbf16>, vector<64x256xbf16>, vector<8x256xf32> -> vector<8x256xf32>
    %8 = arith.addf %3, %7 : vector<8x256xf32>
    %c0_7 = arith.constant 0 : index
    %c0_8 = arith.constant 0 : index
    %9 = vector.load %arg5[%c0_7, %c0_8] : memref<8x256xf32, #tpu.memory_space<vmem>>, vector<8x256xf32>
    tpu.vector_store %arg5[%c0_7, %c0_8], %8 {strides = array<i32>} : memref<8x256xf32, #tpu.memory_space<vmem>>, vector<8x256xf32>,
    %c0_i32_9 = arith.constant 0 : i32
    %10 = arith.cmpi eq, %arg1, %c0_i32_9 : i32
    %11 = arith.extui %10 : i1 to i32
    %c0_i32_10 = arith.constant 0 : i32
    %12 = arith.cmpi ne, %11, %c0_i32_10 : i32
    scf.if %12 {
      %c0_11 = arith.constant 0 : index
      %c0_12 = arith.constant 0 : index
      %13 = vector.load %arg5[%c0_11, %c0_12] : memref<8x256xf32, #tpu.memory_space<vmem>>, vector<8x256xf32>
      %cst_13 = arith.constant dense<0.000000e+00> : vector<8xf32>
      %14 = vector.multi_reduction <add>, %13, %cst_13 [1] : vector<8x256xf32> to vector<8xf32>
      %15 = vector.shape_cast %14 : vector<8xf32> to vector<8x1xf32>
      %16 = arith.mulf %13, %13 : vector<8x256xf32>
      %cst_14 = arith.constant dense<0.000000e+00> : vector<8xf32>
      %17 = vector.multi_reduction <add>, %16, %cst_14 [1] : vector<8x256xf32> to vector<8xf32>
      %18 = vector.shape_cast %17 : vector<8xf32> to vector<8x1xf32>
      %cst_15 = arith.constant 3.906250e-03 : f32
      %19 = vector.broadcast %cst_15 : f32 to vector<8x1xf32>
      %20 = arith.mulf %15, %19 : vector<8x1xf32>
      %cst_16 = arith.constant 3.906250e-03 : f32
      %21 = vector.broadcast %cst_16 : f32 to vector<8x1xf32>
      %22 = arith.mulf %18, %21 : vector<8x1xf32>
      %23 = arith.mulf %20, %20 : vector<8x1xf32>
      %24 = arith.subf %22, %23 : vector<8x1xf32>
      %cst_17 = arith.constant 0.000000e+00 : f32
      %25 = vector.broadcast %cst_17 : f32 to vector<8x1xf32>
      %26 = arith.maximumf %24, %25 : vector<8x1xf32>
      %27 = vector.broadcast %20 : vector<8x1xf32> to vector<8x256xf32>
      %28 = arith.subf %13, %27 : vector<8x256xf32>
      %cst_18 = arith.constant 9.99999974E-6 : f32
      %29 = vector.broadcast %cst_18 : f32 to vector<8x1xf32>
      %30 = arith.addf %26, %29 : vector<8x1xf32>
      %31 = math.rsqrt %30 : vector<8x1xf32>
      %32 = vector.broadcast %31 : vector<8x1xf32> to vector<8x256xf32>
      %33 = arith.mulf %28, %32 : vector<8x256xf32>
      %cst_19 = arith.constant 2.000000e-01 : f32
      %34 = vector.broadcast %cst_19 : f32 to vector<8x256xf32>
      %35 = arith.mulf %34, %33 : vector<8x256xf32>
      %36 = arith.maximumf %33, %35 : vector<8x256xf32>
      %c0_20 = arith.constant 0 : index
      %c0_21 = arith.constant 0 : index
      %c0_22 = arith.constant 0 : index
      %37 = vector.load %arg4[%c0_20, %c0_21, %c0_22] : memref<1x8x256xf32, #tpu.memory_space<vmem>>, vector<1x8x256xf32>
      %38 = vector.shape_cast %37 : vector<1x8x256xf32> to vector<8x256xf32>
      %39 = vector.shape_cast %36 : vector<8x256xf32> to vector<1x8x256xf32>
      tpu.vector_store %arg4[%c0_20, %c0_21, %c0_22], %39 {strides = array<i32>} : memref<1x8x256xf32, #tpu.memory_space<vmem>>, vector<1x8x256xf32>,
    } else {
    }
    return
  }
  func.func @transform_0(%arg0: i32, %arg1: i32) -> (i32, i32) {
    %c0_i32 = arith.constant 0 : i32
    %c0_i32_0 = arith.constant 0 : i32
    return %c0_i32, %arg1 : i32, i32
  }
  func.func @transform_1(%arg0: i32, %arg1: i32) -> (i32, i32, i32) {
    %c0_i32 = arith.constant 0 : i32
    %c0_i32_0 = arith.constant 0 : i32
    return %arg0, %arg1, %c0_i32 : i32, i32, i32
  }
  func.func @transform_2(%arg0: i32, %arg1: i32) -> (i32, i32, i32) {
    %c0_i32 = arith.constant 0 : i32
    %c0_i32_0 = arith.constant 0 : i32
    %c0_i32_1 = arith.constant 0 : i32
    return %arg0, %c0_i32, %c0_i32_0 : i32, i32, i32
  }
}

</mosaic_0001>

<bundles_post_ra>
// kernel: tpu_custom_call.1
= control target key start
LH: loop header
LB: loop body
LE: loop exit
PB: predicated region body
PF: predicated region fallthrough
CT: control target
= control target key end

     0   :  { %7 = vsyncpa [#allocation4], 0  ;;  %s896_s0 = inlined_call_operand.hbm [shape: bf16[8,64], index: 0, kind: input, shape index: {}]   ;;  %s897_s1 = inlined_call_operand.hbm [shape: bf16[2,64,256], index: 1, kind: input, shape index: {}]   ;;  %s898_s2 = inlined_call_operand.hbm [shape: f32[2,8,256], index: 2, kind: output, shape index: {}]  }
   0x1   :  { %8 = vsyncpa [#allocation7], 0 }
   0x2   :  { %10 = vsyncpa [#allocation7 + $0x1], 0 }
   0x3   :  { %11 = vsyncpa [#allocation5], 0 }
   0x4   :  { %13 = vsyncpa [#allocation5 + $0x1], 0  ;;  %s726_s9 = smov 0   ;;  %s728_s10 = smov 0  }
   0x5   :  { %s730_s11 = smov 0   ;;  %s732_s12 = smov 0  }
   0x6   :  { %s734_s13 = smov 0   ;;  %s736_s14 = smov 0  }
   0x7 LB: > { %s447_s15 = sadd.s32 4294967295, %s703_s14   ;;  %s448_s16 = sadd.s32 4294967294, %s703_s14   ;;  %s703_s14 = sphi %s736_s14, %s19_s14   ;;  %s699_s13 = sphi %s734_s13, %s917_s13   ;;  %s695_s12 = sphi %s732_s12, %s916_s12   ;;  %s691_s11 = sphi %s730_s11, %s915_s11   ;;  %s687_s10 = sphi %s728_s10, %s914_s10   ;;  %s683_s9 = sphi %s726_s9, %s913_s9  }
   0x8   : > { %s66_s17 = sadd.s32 1, %s691_s11  ;;  %p73_p0 = scmp.ne.s32.totalorder %s691_s11, %s687_s10 }
   0x9   : > { %p74_p1 = scmp.eq.s32.totalorder %s703_s14, 0  ;;  %p79_p2 = scmp.ne.s32.totalorder %s687_s10, %s683_s9 }
   0xa   : > { %p764_p3 = scmp.eq.s32.totalorder %s447_s15, 0  ;;  %p103_p4 = scmp.eq.s32.totalorder %s447_s15, 1 }
   0xb   : > { %p768_p5 = por %p74_p1, %p73_p0  ;;  %p109_p6 = scmp.eq.s32.totalorder %s448_s16, 1 }
   0xc   : > { %p774_p7 = por %p764_p3, %p79_p2  ;;  %p778_p8 = por %p103_p4, %p73_p0 }
   0xd   : > { %p782_p9 = por %p109_p6, %p79_p2  ;;  %p449_p10 = scmp.ge.s32.totalorder %s703_s14, 1 }
   0xe   : > { %s903_s20 = scalar_select %p774_p7, 1, 0 }
   0xf   : > { %s904_s21 = scalar_select %p778_p8, 1, 0 }
  0x10   : > { %s905_s22 = scalar_select %p782_p9, 1, 0 }
  0x11   : > { %p116_p11 = scmp.lt.s32.totalorder %s703_s14, 3  ;;  %s705_s24 = smov [#allocation3]  }
  0x12   : > { %s131_s25 = sshll.u32 %s705_s24, 4  ;;  %p496_p1 = scmp.lt.s32.totalorder %s703_s14, 2  ;;  %s132_s25 = int_to_ptr.vmem [resolvable:$true] %s131_s25 }
  0x13   : > { %p789_p13 = pnand %p449_p10, %p116_p11  ;;  %s31_s28 = sadd.s32 1, %s699_s13 }
  0x14   : > { %p798_p4 = pnand %p496_p1, %p768_p5  ;;  %p33_p6 = scmp.ge.s32.totalorder %s31_s28, 2 }
  0x15   : > { %p483_p0 = pneg %p789_p13  ;;  %s142_s29 = sand.u32 1, %s691_s11  }
  0x16   : > { %s576_s30 = scalar_lea.vmem %s132_s25, 64  ;;  %p584_p8 = scmp.lt.s32.totalorder %s132_s25, %s132_s25 }
  0x17   : > { %p804_p2 = pnand %p483_p0, %p764_p3  ;;  %p577_p11 = scmp.ne.s32.totalorder %s132_s25, %s576_s30 }
  0x18   : > { %p585_p5 = scmp.lt.s32.totalorder %s576_s30, %s576_s30 }
  0x19   : > { %p567_p10 = pneg %p804_p2 }
  0x1a   : > { %p586_p1 = por %p585_p5, %p584_p8 }
  0x1b   : > { %p579_p12 = pnand %p577_p11, %p567_p10 }
  0x1d   : > { %p580_p9 = pneg %p579_p12 }
  0x1f   : > { %p587_p7 = pnand %p586_p1, %p580_p9 }
  0x21   : > { %590 = shalt.err (!%p587_p7)
}
  0x22   : > { %486 = dma.hbm_to_vmem [thread:$0]  (!%p804_p2), %s896_s0, 64, %s132_s25, [#allocation4]  }
  0x23   : > { %s919_s28 = smov (%p33_p6, %s31_s28), 0  ;;  %s452_s5 = sshll.u32 %s142_s29, 6 }
  0x24   : > { %s61_s6 = ssub.s32 %s699_s13, %s919_s28  ;;  %s473_s7 = sshll.u32 %s699_s13, 10 }
  0x25   : > { %p64_p12 = scmp.eq.s32.totalorder %s61_s6, 0  ;;  %s155_s16 = scalar_lea.hbm %s897_s1, %s473_s7 }
  0x26   : > { %s146_s19 = scalar_lea.vmem [#allocation6], %s452_s5  ;;  %s143_s30 = scalar_lea.sflag [#allocation7], %s142_s29 }
  0x27   : > { %s156_s24 = sshll.u32 %s146_s19, 4  ;;  %p593_p7 = pneg %p798_p4  ;;  %s157_s24 = int_to_ptr.vmem [resolvable:$true] %s156_s24 }
  0x28   : > { %s828_s27 = scalar_select %p64_p12, %s691_s11, %s66_s17  }
  0x29   : > { %s604_s25 = scalar_lea.vmem %s157_s24, 1024  ;;  %s706_s3 = smov [#allocation6]  }
  0x2a   : > { %p605_p8 = scmp.ne.s32.totalorder %s157_s24, %s604_s25  ;;  %s609_s4 = sshll.u32 %s706_s3, 4  ;;  %s610_s4 = int_to_ptr.vmem [resolvable:$false] %s609_s4 }
  0x2b   : > { %s611_s6 = scalar_lea.vmem %s610_s4, 2048  ;;  %p612_p2 = scmp.lt.s32.totalorder %s157_s24, %s610_s4 }
  0x2c   : > { %p607_p9 = pnand %p605_p8, %p593_p7  ;;  %p613_p6 = scmp.lt.s32.totalorder %s611_s6, %s604_s25 }
  0x2e   : > { %p608_p0 = pneg %p607_p9  ;;  %p614_p10 = por %p613_p6, %p612_p2 }
  0x30   : > { %p615_p11 = pnand %p614_p10, %p608_p0 }
  0x32   : > { %618 = shalt.err (!%p615_p11)
}
  0x33   : > { %s707_s5 = smov 128   ;;  %s708_s17 = smov 8  }
  0x34   : > { %490 = dma.hbm_to_vmem [thread:$0]  (!%p798_p4), %s155_s16, 1024, %s157_s24, %s143_s30, %s707_s5, %s707_s5, %s708_s17  }
  0x35   : > { %168 = sbr.rel (%p789_p13) target bundleno = 460 (0x1cc), region = 28 }
  0x3a   : > { %670 = dma.done.wait (%p764_p3), [#allocation4], 64  }
  0x3b   : > { %672 = vsyncadd (%p764_p3), [#allocation4], 4294967232  ;;  %s841_s29 = sand.u32 1, %s687_s10   ;;  %p909_p5 = scmp.ne.s32.totalorder %s903_s20, 0 }
  0x3c   : > { %s457_s7 = sshll.u32 %s841_s29, 6  ;;  %s175_s8 = scalar_lea.sflag [#allocation7], %s841_s29 }
  0x3d   : > { %s178_s15 = scalar_lea.vmem [#allocation6], %s457_s7 }
  0x3e   : > { %674 = dma.done.wait (%p909_p5), %s175_s8, 1024  }
  0x3f   : > { %676 = vsyncadd (%p909_p5), %s175_s8, 4294966272  ;;  %v709_v0 = vmov 0   ;;  %v551_v1 = vld [vmem:[%s178_s15 + $0x34] ss:$8 sps:$4 sm:$0xff]   ;;  %v553_v2 = vld [vmem:[%s178_s15 + $0x30] ss:$8 sps:$4 sm:$0xff]  }
  0x40   : > { %294 = vmatprep.mubr.bf16.mxu0 %v709_v0  ;;  %270 = vmatprep.subr.bf16.mxu0 %v551_v1  ;;  %v554_v3 = vld [vmem:[%s178_s15 + $0x24] ss:$8 sps:$4 sm:$0xff]   ;;  %v556_v4 = vld [vmem:[%s178_s15 + $0x20] ss:$8 sps:$4 sm:$0xff]   ;;  %v557_v5 = vld [vmem:[%s178_s15 + $0x14] ss:$8 sps:$4 sm:$0xff]  }
  0x41   : > { %271 = vmatpush1.bf16.msra.mxu0 %v553_v2  ;;  %v559_v6 = vld [vmem:[%s178_s15 + $0x10] ss:$8 sps:$4 sm:$0xff]   ;;  %v560_v7 = vld [vmem:[%s178_s15 + $0x4] ss:$8 sps:$4 sm:$0xff]   ;;  %v562_v8 = vld [vmem:[%s178_s15] ss:$8 sps:$4 sm:$0xff]  }
  0x42   : > { %272 = vmatprep.subr.bf16.mxu0 %v554_v3  ;;  %v209_v9 = vld [vmem:[#allocation3] sm:$0xf]  ;;  %vm258_vm0 = vcmask 523264   ;;  %s458_s18 = sshll.u32 %s841_s29, 4  ;;  %s474_s20 = sshll.u32 %s695_s12, 8 }
  0x43   : > { %s198_s23 = scalar_lea.vmem [#allocation8], %s458_s18  ;;  %s854_s24 = scalar_lea.hbm %s898_s2, %s474_s20 }
  0x44   : > { %s352_s26 = sshll.u32 %s198_s23, 4  ;;  %s338_s30 = scalar_lea.sflag [#allocation5], %s841_s29  ;;  %s353_s26 = int_to_ptr.vmem [resolvable:$true] %s352_s26 }
  0x45   : > { %273 = vmatpush1.bf16.msra.mxu0 %v556_v4  ;;  %s619_s25 = scalar_lea.vmem %s353_s26, 256  ;;  %p910_p13 = scmp.ne.s32.totalorder %s904_s21, 0 }
  0x46   : > { %274 = vmatprep.subr.bf16.mxu0 %v557_v5  ;;  %p620_p3 = scmp.ne.s32.totalorder %s353_s26, %s619_s25  ;;  %s710_s12 = smov [#allocation8]  }
  0x47   : > { %s623_s3 = sshll.u32 %s710_s12, 4  ;;  %s624_s3 = int_to_ptr.vmem [resolvable:$false] %s623_s3 }
  0x48   : > { %p621_p4 = pnand %p620_p3, %p910_p13  ;;  %s625_s4 = scalar_lea.vmem %s624_s3, 512 }
  0x49   : > { %275 = vmatpush1.bf16.msra.mxu0 %v559_v6  ;;  %p626_p12 = scmp.lt.s32.totalorder %s353_s26, %s624_s3  ;;  %p627_p7 = scmp.lt.s32.totalorder %s625_s4, %s619_s25 }
  0x4a   : > { %276 = vmatprep.subr.bf16.mxu0 %v560_v7  ;;  %p622_p1 = pneg %p621_p4 }
  0x4b   : > { %p628_p8 = por %p627_p7, %p626_p12 }
  0x4d   : > { %277 = vmatpush1.bf16.msra.mxu0 %v562_v8  ;;  %p629_p9 = pnand %p628_p8, %p622_p1 }
  0x50   : > { %467 = vmatmul.mubr.msk.bf16.vlgmr.msra.gmra.mxu0 %vm258_vm0, %v209_v9 }
 0x110   : > { %v296_v10 = vpop.f32.mrf.mxu0 }
 0x111   : > { %v315_v15 = vmul.f32 %v296_v10, %v296_v10 }
 0x112   : > { %v298_v11 = vpop.f32.mrf.mxu0 }
 0x113   : > { %v312_v12 = vadd.f32 %v298_v11, %v296_v10  ;;  %v316_v13 = vmul.f32 %v298_v11, %v298_v11 }
 0x114   : > { %v300_v14 = vpop.f32.mrf.mxu0 }
 0x115   : > { %313 = vadd.xlane.f32.xlu0 %v312_v12  ;;  %v317_v17 = vadd.f32 %v316_v13, %v315_v15 }
 0x116   : > { %v301_v16 = vpop.f32.mrf.mxu0 }
 0x119   : > { %318 = vadd.xlane.f32.xlu0 %v317_v17 }
 0x19e   : > { %v314_v18 = vpop.xlane.xlu0 %313 }
 0x19f   : > { %v320_v19 = vmul.f32 0.00390625, %v314_v18 }
 0x1a1   : > { %v322_v21 = vmul.f32 %v320_v19, %v320_v19  ;;  %v325_v26 = vsub.f32 %v296_v10, %v320_v19  ;;  %v326_v27 = vsub.f32 %v298_v11, %v320_v19 }
 0x1a2   : > { %v319_v20 = vpop.xlane.xlu0 %318 }
 0x1a3   : > { %v321_v22 = vmul.f32 0.00390625, %v319_v20 }
 0x1a5   : > { %v323_v23 = vsub.f32 %v321_v22, %v322_v21 }
 0x1a7   : > { %v324_v24 = vmax.f32 %v323_v23, 0.0 }
 0x1a9   : > { %v327_v25 = vadd.f32 1e-05, %v324_v24 }
 0x1ab   : > { %563 = vrsqrt.f32 %v327_v25 }
 0x1b8   : > { %v564_v28 = vpop.eup %563 }
 0x1b9   : > { %v329_v29 = vmul.f32 %v564_v28, %v325_v26  ;;  %v330_v30 = vmul.f32 %v564_v28, %v326_v27 }
 0x1bb   : > { %v331_v31 = vmul.f32 0.2, %v329_v29  ;;  %v332_v32 = vmul.f32 0.2, %v330_v30 }
 0x1bd   : > { %v333_v33 = vmax.f32 %v329_v29, %v331_v31  ;;  %v334_v34 = vmax.f32 %v330_v30, %v332_v32 }
 0x1bf   : > { %335 = vst [vmem:[%s198_s23] sm:$0xff] %v333_v33  ;;  %336 = vst [vmem:[%s198_s23 + $0x8] sm:$0xff] %v334_v34 }
 0x1c0   : > { %632 = shalt.err (!%p629_p9)
}
 0x1c1   : > { %s633_s6 = scalar_lea.hbm %s854_s24, 256  ;;  %s637_s29 = scalar_lea.hbm %s898_s2, 512 }
 0x1c2   : > { %p634_p0 = scmp.ne.s32.totalorder %s854_s24, %s633_s6  ;;  %p638_p10 = scmp.lt.s32.totalorder %s854_s24, %s898_s2 }
 0x1c3   : > { %p639_p11 = scmp.lt.s32.totalorder %s637_s29, %s633_s6 }
 0x1c4   : > { %p635_p2 = pnand %p634_p0, %p910_p13 }
 0x1c5   : > { %p640_p5 = por %p639_p11, %p638_p10 }
 0x1c6   : > { %p636_p6 = pneg %p635_p2 }
 0x1c8   : > { %p641_p3 = pnand %p640_p5, %p636_p6 }
 0x1ca   : > { %644 = shalt.err (!%p641_p3)
}
 0x1cb   : > { %481 = dma.vmem_to_hbm [thread:$0]  (%p910_p13), %s353_s26, 256, %s854_s24, %s338_s30  }
 0x1cc PF: > { %s364_s15 = sand.u32 1, %s683_s9   ;;  %p911_p4 = scmp.ne.s32.totalorder %s905_s22, 0 }
 0x1cd   : > { %p912_p1 = scmp.ge.s32.totalorder %s703_s14, 2  ;;  %s365_s18 = scalar_lea.sflag [#allocation5], %s364_s15 }
 0x1cf   : > { %p492_p12 = pnand %p912_p1, %p911_p4 }
 0x1d1   : > { %p493_p7 = pneg %p492_p12 }
 0x1d3   : > { %678 = dma.done.wait (%p493_p7), %s365_s18, 256  }
 0x1d4   : > { %680 = vsyncadd (%p493_p7), %s365_s18, 4294967040  ;;  %s19_s14 = sadd.s32 1, %s703_s14   ;;  %s913_s9 = smov %s687_s10 }
 0x1d5   : > { %p16_p8 = scmp.ge.s32.totalorder %s19_s14, 4   ;;  %s914_s10 = smov %s691_s11 }
 0x1d6   : > { %s915_s11 = smov %s828_s27  ;;  %s916_s12 = smov %s699_s13 }
 0x1d7   : > { %s917_s13 = smov %s919_s28  ;;  %18 = sbr.rel (!%p16_p8) target bundleno = 7 (0x7), region = 87 }
 0x1dc   :  { %370 = vsyncpa [#allocation4], 1 }
 0x1dd   :  { %372 = vsyncpa [#allocation4 + $0x1], 1 }
 0x1de   :  { %373 = vsyncpa [#allocation7], 1 }
 0x1df   :  { %375 = vsyncpa [#allocation7 + $0x1], 1 }
 0x1e0   :  { %376 = vsyncpa [#allocation5], 1 }
 0x1e1   :  { %378 = vsyncpa [#allocation5 + $0x1], 1 }

</bundles_post_ra>
